<compile_context>
chip_gen: v7x
topology: tpu7x:2x2x1
jax: 0.10.0
libtpu: 0.0.40
codegen_flags: <defaults>
</compile_context>

<pallas_src>
import functools
import numpy as np
import jax
import jax.numpy as jnp
from jax import lax
from jax.experimental import pallas as pl
from jax.experimental.pallas import tpu as pltpu


# --------------------------------------------------------------------------
# Helpers: hardware query, tiling / VMEM budgeting
# --------------------------------------------------------------------------
def _round_up(v, m):
    return ((v + m - 1) // m) * m


def _pad8(v):
    return _round_up(v, 8)


def _vmem_capacity_bytes():
    """Per-core physical VMEM; conservative fallback if the query fails."""
    try:
        info = pltpu.get_tpu_info()
        cap = getattr(info, "vmem_capacity_bytes", None)
        if cap:
            return int(cap)
    except Exception:
        pass
    return 64 * 1024 * 1024  # v7x per-TensorCore VMEM (smallest of v5e/v6e/v7x)


def _vmem_limit(footprint, vmem_cap):
    """Actual footprint + headroom, capped well below physical VMEM."""
    limit = max(int(footprint * 1.25) + (2 << 20), 8 << 20)
    return min(limit, (vmem_cap * 3) // 4)


def _select_blocks(N, M, K, Cout, itemsize, vmem_cap):
    """Pick (NB, TM): images per grid step and spatial lanes per tile."""
    # Budget for the double-buffered input+output tiles of one grid step.
    budget = min(vmem_cap // 2, 40 << 20)
    per_lane = 2 * itemsize * (_pad8(K) + _pad8(Cout))  # 2x = double buffered

    tm_cap = max((budget // per_lane) // 128 * 128, 128)

    if M > tm_cap:
        nb, tm = 1, tm_cap
    else:
        tm = M  # full extent: any M is a legal block
        # Tiny spatial extent: block several images per step to amortize the
        # fixed ~0.35us per-grid-step overhead.
        bytes_per_image = per_lane * _round_up(max(M, 1), 128)
        nb_cap = max(1, min(N,
                            (4 << 20) // max(bytes_per_image, 1),
                            budget // max(bytes_per_image, 1)))
        nb = 1
        for d in range(1, N + 1):  # largest divisor of N <= nb_cap
            if N % d == 0 and d <= nb_cap:
                nb = d

    # v7x has two TensorCores: keep the 'parallel' grid at >= 2 steps.
    def _steps(nb_, tm_):
        return (N // nb_) * pl.cdiv(M, tm_)

    if _steps(nb, tm) < 2:
        if nb > 1:
            half = max(1, nb // 2)
            nb = max(d for d in range(1, half + 1) if N % d == 0)
        elif M > 128:
            tm = _round_up(pl.cdiv(M, 2), 128)
    return nb, tm


# --------------------------------------------------------------------------
# k == 1 path: lane-dense matmul kernel
# --------------------------------------------------------------------------
def _fromrgb_mm_kernel(x_ref, w_ref, b_ref, o_ref, *, neg_slope, nb):
    # x_ref: (NB, K, TM)   input tile, K = Cin (lane dim = spatial tile)
    # w_ref: (Cout, K)     conv weight with wscale folded in
    # b_ref: (Cout, 1)     wscale bias (f32)
    # o_ref: (NB, Cout, TM) lane-dense output tile
    w = w_ref[...]
    b = b_ref[...]
    for i in range(nb):  # static unroll over the blocked batch images
        y = jnp.dot(w, x_ref[i], preferred_element_type=jnp.float32)
        y = y + b
        o_ref[i] = jnp.where(y >= 0.0, y, neg_slope * y).astype(o_ref.dtype)


def _from_rgb_1x1(x_nchw, conv_weight, wscale_bias, *, gain, neg_slope):
    N, Cin, H, W = x_nchw.shape
    Cout = conv_weight.shape[0]
    K = Cin
    M = H * W
    scale = float(gain) / float(np.sqrt(K))

    x_mat = x_nchw.reshape(N, K, M)                                   # free reshape
    w_mat = (conv_weight.reshape(Cout, K) * scale).astype(x_nchw.dtype)
    b_mat = wscale_bias.reshape(Cout, 1).astype(jnp.float32)

    itemsize = np.dtype(x_nchw.dtype).itemsize
    vmem_cap = _vmem_capacity_bytes()
    nb, tm = _select_blocks(N, M, K, Cout, itemsize, vmem_cap)

    # Actual double-buffered VMEM footprint of one grid step.
    in_tile = nb * _pad8(K) * _round_up(tm, 128) * itemsize
    out_tile = nb * _pad8(Cout) * _round_up(tm, 128) * itemsize
    const_bytes = _pad8(Cout) * (_round_up(K, 128) * itemsize + 128 * 4)
    footprint = 2 * (in_tile + out_tile) + 2 * const_bytes

    grid = (N // nb, pl.cdiv(M, tm))
    kernel = functools.partial(_fromrgb_mm_kernel, neg_slope=neg_slope, nb=nb)

    cost = pl.CostEstimate(
        flops=2 * N * M * K * Cout,
        transcendentals=0,
        bytes_accessed=(itemsize * N * K * M + itemsize * N * Cout * M
                        + itemsize * Cout * K + 4 * Cout),
    )

    out = pl.pallas_call(
        kernel,
        out_shape=jax.ShapeDtypeStruct((N, Cout, M), x_nchw.dtype),
        grid_spec=pltpu.PrefetchScalarGridSpec(
            num_scalar_prefetch=0,
            grid=grid,
            in_specs=[
                # (NB, K, TM) input tile, walked over (batch blocks, spatial tiles)
                pl.BlockSpec((nb, K, tm), lambda n, m: (n, 0, m)),
                # weight + bias: whole (tiny) arrays, resident across the grid
                pl.BlockSpec((Cout, K), lambda n, m: (0, 0)),
                pl.BlockSpec((Cout, 1), lambda n, m: (0, 0)),
            ],
            out_specs=pl.BlockSpec((nb, Cout, tm), lambda n, m: (n, 0, m)),
        ),
        compiler_params=pltpu.CompilerParams(
            dimension_semantics=("parallel", "parallel"),
            vmem_limit_bytes=_vmem_limit(footprint, vmem_cap),
        ),
        cost_estimate=cost,
    )(x_mat, w_mat, b_mat)

    # (N, Cout, H*W) -> (N, Cout, H, W): pure reshape, no transpose.
    return out.reshape(N, Cout, H, W)


# --------------------------------------------------------------------------
# k > 1 path: tap-accumulating kernel (no HBM im2col)
# --------------------------------------------------------------------------
def _fromrgb_tap_kernel(x_ref, w_ref, b_ref, o_ref, *, k, neg_slope):
    # x_ref: (Cin, H, W)       whole image (batch dim squeezed)
    # w_ref: (k*k, Cout, Cin)  per-tap weights with wscale folded in
    # b_ref: (Cout, 1)         wscale bias (f32)
    # o_ref: (Cout, Ho, Wo)
    Cout, Ho, Wo = o_ref.shape
    w = w_ref[...]
    b = b_ref[...]

    @pl.loop(0, Ho)
    def _(h):
        acc = jnp.zeros((Cout, Wo), dtype=jnp.float32)
        for di in range(k):
            xrow = x_ref[:, pl.ds(h + di, 1), :][:, 0, :]          # (Cin, W)
            for dj in range(k):
                acc = acc + jnp.dot(w[di * k + dj], xrow[:, dj:dj + Wo],
                                    preferred_element_type=jnp.float32)
        acc = acc + b
        acc = jnp.where(acc >= 0.0, acc, neg_slope * acc)
        o_ref[:, pl.ds(h, 1), :] = acc[:, None, :].astype(o_ref.dtype)


def _from_rgb_kxk(x_nchw, conv_weight, wscale_bias, *, gain, neg_slope):
    N, Cin, H, W = x_nchw.shape
    Cout, _, k, _ = conv_weight.shape
    Ho, Wo = H - k + 1, W - k + 1
    scale = float(gain) / float(np.sqrt(Cin * k * k))

    # (Cout, Cin, k, k) -> (k*k, Cout, Cin); tiny array, negligible cost.
    w_taps = (jnp.transpose(conv_weight, (2, 3, 0, 1)).reshape(k * k, Cout, Cin)
              * scale).astype(x_nchw.dtype)
    b_mat = wscale_bias.reshape(Cout, 1).astype(jnp.float32)

    itemsize = np.dtype(x_nchw.dtype).itemsize
    vmem_cap = _vmem_capacity_bytes()

    in_block = Cin * _pad8(H) * _round_up(W, 128) * itemsize
    out_block = Cout * _pad8(Ho) * _round_up(Wo, 128) * itemsize
    const_bytes = (k * k * _pad8(Cout) * _round_up(Cin, 128) * itemsize
                   + _pad8(Cout) * 128 * 4)
    footprint = 2 * (in_block + out_block) + 2 * const_bytes

    kernel = functools.partial(_fromrgb_tap_kernel, k=k, neg_slope=neg_slope)
    cost = pl.CostEstimate(
        flops=2 * N * Ho * Wo * Cin * k * k * Cout,
        transcendentals=0,
        bytes_accessed=(itemsize * (N * Cin * H * W + N * Cout * Ho * Wo
                                    + k * k * Cout * Cin) + 4 * Cout),
    )

    return pl.pallas_call(
        kernel,
        out_shape=jax.ShapeDtypeStruct((N, Cout, Ho, Wo), x_nchw.dtype),
        grid_spec=pltpu.PrefetchScalarGridSpec(
            num_scalar_prefetch=0,
            grid=(N,),
            in_specs=[
                pl.BlockSpec((None, Cin, H, W), lambda n: (n, 0, 0, 0)),
                pl.BlockSpec((k * k, Cout, Cin), lambda n: (0, 0, 0)),
                pl.BlockSpec((Cout, 1), lambda n: (0, 0)),
            ],
            out_specs=pl.BlockSpec((None, Cout, Ho, Wo), lambda n: (n, 0, 0, 0)),
        ),
        compiler_params=pltpu.CompilerParams(
            dimension_semantics=("parallel",),
            vmem_limit_bytes=_vmem_limit(footprint, vmem_cap),
        ),
        cost_estimate=cost,
    )(x_nchw, w_taps, b_mat)


# --------------------------------------------------------------------------
# Public wrapper
# --------------------------------------------------------------------------
def from_rgb(x_nchw, conv_weight, wscale_bias, *, gain=np.sqrt(2.0), neg_slope=0.2):
    """FromRGB forward.

    x_nchw:      (N, Cin, H, W)
    conv_weight: (Cout, Cin, k, k)
    wscale_bias: (Cout,)
    returns      (N, Cout, Ho, Wo)
    """
    _, _, k, k2 = conv_weight.shape
    assert k == k2
    if k == 1:
        return _from_rgb_1x1(x_nchw, conv_weight, wscale_bias,
                             gain=gain, neg_slope=neg_slope)
    return _from_rgb_kxk(x_nchw, conv_weight, wscale_bias,
                         gain=gain, neg_slope=neg_slope)


# --------------------------------------------------------------------------
# Reference + test
# --------------------------------------------------------------------------
def _reference(x_nchw, conv_weight, wscale_bias, gain=np.sqrt(2.0), neg_slope=0.2):
    Cout, Cin, k, _ = conv_weight.shape
    scale = gain / np.sqrt(Cin * k * k)
    y = lax.conv_general_dilated(
        x_nchw, conv_weight, window_strides=(1, 1), padding="VALID",
        dimension_numbers=("NCHW", "OIHW", "NCHW"),
        precision=lax.Precision.HIGHEST)
    y = y * scale + wscale_bias.reshape(1, Cout, 1, 1)
    return jnp.where(y >= 0, y, neg_slope * y)


if __name__ == "__main__":
    key = jax.random.PRNGKey(0)
    kx, kw, kb, kx2, kw2, kb2 = jax.random.split(key, 6)

    # FromRGB as used in the attribute net: 1x1 conv on an RGB image.
    N, Cin, H, W = 2, 3, 16, 16
    Cout, k = 32, 1
    x = jax.random.normal(kx, (N, Cin, H, W), dtype=jnp.float32)
    conv_weight = jax.random.normal(kw, (Cout, Cin, k, k), dtype=jnp.float32) * 0.1
    wscale_bias = jax.random.normal(kb, (Cout,), dtype=jnp.float32)

    out = from_rgb(x, conv_weight, wscale_bias)
    jax.block_until_ready(out)
    ref = _reference(x, conv_weight, wscale_bias)
    np.testing.assert_allclose(np.asarray(out), np.asarray(ref), rtol=1e-5, atol=1e-5)

    # k > 1 fallback (tap-accumulating kernel, no HBM im2col).
    N2, Cin2, H2, W2, Cout2, k2 = 2, 3, 12, 12, 8, 3
    x2 = jax.random.normal(kx2, (N2, Cin2, H2, W2), dtype=jnp.float32)
    w2 = jax.random.normal(kw2, (Cout2, Cin2, k2, k2), dtype=jnp.float32) * 0.1
    b2 = jax.random.normal(kb2, (Cout2,), dtype=jnp.float32)
    out2 = from_rgb(x2, w2, b2)
    jax.block_until_ready(out2)
    ref2 = _reference(x2, w2, b2)
    np.testing.assert_allclose(np.asarray(out2), np.asarray(ref2), rtol=1e-4, atol=1e-5)

    print("KERNEL_OK")
</pallas_src>

<mosaic_0001>
module attributes {stable_mosaic.version = 11 : i64} {
  func.func @_fromrgb_mm_kernel(%arg0: i32, %arg1: i32, %arg2: memref<1x3x256xf32, #tpu.memory_space<vmem>>, %arg3: memref<32x3xf32, #tpu.memory_space<vmem>>, %arg4: memref<32x1xf32, #tpu.memory_space<vmem>>, %arg5: memref<1x32x256xf32, #tpu.memory_space<vmem>>) attributes {dimension_semantics = [#tpu.dimension_semantics<parallel>, #tpu.dimension_semantics<parallel>], iteration_bounds = array<i64: 2, 1>, scalar_prefetch = 0 : i64, scratch_operands = 0 : i64, tpu.core_type = #tpu.core_type<tc>, window_params = [{transform_indices = @transform_0, window_bounds = array<i64: 1, 3, 256>}, {pipeline_mode = #tpu.pipeline_mode<synchronous>, transform_indices = @transform_1, window_bounds = array<i64: 32, 3>}, {pipeline_mode = #tpu.pipeline_mode<synchronous>, transform_indices = @transform_2, window_bounds = array<i64: 32, 1>}, {transform_indices = @transform_3, window_bounds = array<i64: 1, 32, 256>}]} {
    %c0 = arith.constant 0 : index
    %c0_0 = arith.constant 0 : index
    %0 = vector.load %arg3[%c0, %c0_0] : memref<32x3xf32, #tpu.memory_space<vmem>>, vector<32x3xf32>
    %c0_1 = arith.constant 0 : index
    %c0_2 = arith.constant 0 : index
    %1 = vector.load %arg4[%c0_1, %c0_2] : memref<32x1xf32, #tpu.memory_space<vmem>>, vector<32x1xf32>
    %c0_3 = arith.constant 0 : index
    %c0_4 = arith.constant 0 : index
    %c0_5 = arith.constant 0 : index
    %2 = vector.load %arg2[%c0_3, %c0_4, %c0_5] : memref<1x3x256xf32, #tpu.memory_space<vmem>>, vector<1x3x256xf32>
    %3 = vector.shape_cast %2 : vector<1x3x256xf32> to vector<3x256xf32>
    %cst = arith.constant dense<0.000000e+00> : vector<32x256xf32>
    %4 = tpu.matmul %0, %3, %cst {dimension_numbers = #tpu.dot_dimension_numbers<[1], [0], [0], [1], [0, 0, 1, 1], [], []>} : vector<32x3xf32>, vector<3x256xf32>, vector<32x256xf32> -> vector<32x256xf32>
    %5 = vector.broadcast %1 : vector<32x1xf32> to vector<32x256xf32>
    %6 = arith.addf %4, %5 : vector<32x256xf32>
    %cst_6 = arith.constant 0.000000e+00 : f32
    %7 = vector.broadcast %cst_6 : f32 to vector<32x256xf32>
    %8 = arith.cmpf oge, %6, %7 : vector<32x256xf32>
    %cst_7 = arith.constant 2.000000e-01 : f32
    %9 = vector.broadcast %cst_7 : f32 to vector<32x256xf32>
    %10 = arith.mulf %9, %6 : vector<32x256xf32>
    %11 = arith.select %8, %6, %10 : vector<32x256xi1>, vector<32x256xf32>
    %c0_8 = arith.constant 0 : index
    %c0_9 = arith.constant 0 : index
    %c0_10 = arith.constant 0 : index
    %12 = vector.load %arg5[%c0_8, %c0_9, %c0_10] : memref<1x32x256xf32, #tpu.memory_space<vmem>>, vector<1x32x256xf32>
    %13 = vector.shape_cast %12 : vector<1x32x256xf32> to vector<32x256xf32>
    %14 = vector.shape_cast %11 : vector<32x256xf32> to vector<1x32x256xf32>
    tpu.vector_store %arg5[%c0_8, %c0_9, %c0_10], %14 {strides = array<i32>} : memref<1x32x256xf32, #tpu.memory_space<vmem>>, vector<1x32x256xf32>,
    return
  }
  func.func @transform_0(%arg0: i32, %arg1: i32) -> (i32, i32, i32) {
    %c0_i32 = arith.constant 0 : i32
    %c0_i32_0 = arith.constant 0 : i32
    return %arg0, %c0_i32, %arg1 : i32, i32, i32
  }
  func.func @transform_1(%arg0: i32, %arg1: i32) -> (i32, i32) {
    %c0_i32 = arith.constant 0 : i32
    %c0_i32_0 = arith.constant 0 : i32
    %c0_i32_1 = arith.constant 0 : i32
    return %c0_i32, %c0_i32_0 : i32, i32
  }
  func.func @transform_2(%arg0: i32, %arg1: i32) -> (i32, i32) {
    %c0_i32 = arith.constant 0 : i32
    %c0_i32_0 = arith.constant 0 : i32
    %c0_i32_1 = arith.constant 0 : i32
    return %c0_i32, %c0_i32_0 : i32, i32
  }
  func.func @transform_3(%arg0: i32, %arg1: i32) -> (i32, i32, i32) {
    %c0_i32 = arith.constant 0 : i32
    %c0_i32_0 = arith.constant 0 : i32
    return %arg0, %c0_i32, %arg1 : i32, i32, i32
  }
}

</mosaic_0001>

<bundles_post_ra>
// kernel: tpu_custom_call.1
= control target key start
LH: loop header
LB: loop body
LE: loop exit
PB: predicated region body
PF: predicated region fallthrough
CT: control target
= control target key end

     0   :  { %8 = vsyncpa [#allocation3], 0  ;;  %s809_s0 = inlined_call_operand.vmem [shape: f32[2,3,256], index: 0, kind: input, shape index: {}]   ;;  %s810_s1 = inlined_call_operand.vmem [shape: f32[32,3], index: 1, kind: input, shape index: {}]   ;;  %s811_s2 = inlined_call_operand.vmem [shape: f32[32,1], index: 2, kind: input, shape index: {}]   ;;  %s812_s3 = inlined_call_operand.hbm [shape: f32[2,32,256], index: 3, kind: output, shape index: {}]  }
   0x1   :  { %10 = vsyncpa [#allocation3 + $0x1], 0  ;;  %s655_s12 = smov 0   ;;  %s657_s13 = smov 0  }
   0x2   :  { %s659_s14 = smov 0   ;;  %s661_s15 = smov 0  }
   0x3   :  { %s663_s16 = smov 0   ;;  %s665_s17 = smov 0  }
   0x4 LB: > { %s465_s18 = sadd.s32 4294967295, %s628_s17   ;;  %s466_s19 = sadd.s32 4294967294, %s628_s17   ;;  %s628_s17 = sphi %s665_s17, %s16_s17   ;;  %s624_s16 = sphi %s663_s16, %s819_s16   ;;  %s620_s15 = sphi %s661_s15, %s818_s15   ;;  %s616_s14 = sphi %s659_s14, %s817_s14   ;;  %s612_s13 = sphi %s657_s13, %s816_s13   ;;  %s608_s12 = sphi %s655_s12, %s815_s12  }
   0x5   : > { %s28_s20 = sadd.s32 1, %s624_s16  ;;  %s107_s21 = sadd.s32 1, %s616_s14 }
   0x6   : > { %p30_p0 = scmp.ge.s32.totalorder %s28_s20, 2  ;;  %p117_p1 = scmp.ne.s32.totalorder %s616_s14, %s612_s13 }
   0x7   : > { %p118_p2 = scmp.eq.s32.totalorder %s465_s18, 1  ;;  %p123_p3 = scmp.ne.s32.totalorder %s612_s13, %s608_s12 }
   0x8   : > { %s821_s20 = smov (%p30_p0, %s28_s20), 0  ;;  %p124_p5 = scmp.eq.s32.totalorder %s466_s19, 1 }
   0x9   : > { %p695_p4 = por %p118_p2, %p117_p1  ;;  %s102_s23 = ssub.s32 %s624_s16, %s821_s20 }
   0xa   : > { %p469_p6 = scmp.ge.s32.totalorder %s628_s17, 1  ;;  %p105_p7 = scmp.eq.s32.totalorder %s102_s23, 0 }
   0xb   : > { %p702_p8 = por %p124_p5, %p123_p3  ;;  %p161_p9 = scmp.lt.s32.totalorder %s628_s17, 3 }
   0xc   : > { %s708_s25 = scalar_select %p105_p7, %s616_s14, %s107_s21  }
   0xd   : > { %p162_p10 = pnand %p469_p6, %p161_p9 }
   0xe   : > { %p190_p11 = scmp.lt.s32.totalorder (!%p162_p10), %s620_s15, 1  ;;  %v630_v0 = vmov (!%p162_p10), 0.0   ;;  %v206_v1 = vld [vmem:[%s811_s2 + $0x10] sm:$0xff] (!%p162_p10)  ;;  %v631_v2 = vmov (!%p162_p10), 0   ;;  %v204_v3 = vld [vmem:[%s811_s2] sm:$0xff] (!%p162_p10)  ;;  %v207_v4 = vld [vmem:[%s811_s2 + $0x18] sm:$0xff] (!%p162_p10) }
   0xf   : > { %165 = sbr.rel (%p162_p10) target bundleno = 270 (0x10e), region = 32  ;;  %313 = vmatprep.mubr.f32.mxu0 (!%p162_p10), %v630_v0  ;;  %325 = vmatprep.mubr.f32.mxu1 (!%p162_p10), %v630_v0  ;;  %v205_v5 = vld [vmem:[%s811_s2 + $0x8] sm:$0xff] (!%p162_p10)  ;;  %vm244_vm0 = vcmask (!%p162_p10), 1042432   ;;  %v200_v8 = vld [vmem:[%s810_s1] sm:$0xff] (!%p162_p10)  ;;  %vm231_vm1 = vcmask (!%p162_p10), 23552   ;;  %v202_v9 = vld [vmem:[%s810_s1 + $0x10] sm:$0xff] (!%p162_p10) }
  0x10   : > { %548 = vset.pattern.permute.xlu1 (!%p162_p10), %v631_v2  ;;  %547 = vset.pattern.permute.xlu0 (!%p162_p10), %v631_v2  ;;  %v201_v10 = vld [vmem:[%s810_s1 + $0x8] sm:$0xff] (!%p162_p10)  ;;  %v203_v11 = vld [vmem:[%s810_s1 + $0x18] sm:$0xff] (!%p162_p10)  ;;  %s186_s30 = sand.u32 (!%p162_p10), 1, %s612_s13   ;;  %s485_s6 = sshll.u32 (!%p162_p10), %s620_s15, 10 }
  0x11   : > { %221 = vperm.xlu1 (!%p162_p10), %548, %v206_v1   ;;  %211 = vperm.xlu0 (!%p162_p10), %547, %v204_v3   ;;  %s753_s9 = scalar_lea.hbm (!%p162_p10), %s812_s3, %s485_s6  ;;  %s763_s10 = scalar_lea.sflag (!%p162_p10), [#allocation3], %s186_s30 }
  0x12   : > { %s632_s18 = smov (!%p162_p10), [#allocation2]  }
  0x13   : > { %s554_s19 = sshll.u32 (!%p162_p10), %s632_s18, 4  ;;  %s555_s19 = int_to_ptr.vmem [resolvable:$false] %s554_s19 }
  0x14   : > { %s556_s21 = scalar_lea.vmem (!%p162_p10), %s555_s19, 2048 }
  0x15   : > { %226 = vperm.xlu1 (!%p162_p10), %548, %v207_v4   ;;  %216 = vperm.xlu0 (!%p162_p10), %547, %v205_v5  }
  0x16   : > { %s191_s28 = scalar_select %p190_p11, %s620_s15, 1 }
  0x18   : > { %s484_s4 = sshll.u32 %s191_s28, 3 }
  0x19   : > { %s197_s11 = scalar_lea.vmem %s809_s0, %s484_s4  ;;  %s470_s4 = sshll.u32 %s186_s30, 6 }
  0x1a   : > { %v208_v6 = vld [vmem:[%s197_s11] sm:$0x77]  ;;  %s742_s5 = scalar_lea.vmem [#allocation2], %s470_s4 }
  0x1b   : > { %v230_v7 = vcombine.high %v208_v6, %v208_v6  ;;  %s386_s7 = sshll.u32 %s742_s5, 4  ;;  %s755_s7 = int_to_ptr.vmem [resolvable:$true] %s386_s7 }
  0x1c   : > { %s550_s11 = scalar_lea.vmem %s755_s7, 1024  ;;  %p557_p1 = scmp.lt.s32.totalorder %s755_s7, %s555_s19 }
  0x1d   : > { %473 = vmatprep.subr.msk.mxu0 %vm244_vm0, %v230_v7  ;;  %486 = vmatprep.subr.msk.mxu1 %vm244_vm0, %v230_v7  ;;  %p551_p12 = scmp.ne.s32.totalorder %s755_s7, %s550_s11  ;;  %p558_p2 = scmp.lt.s32.totalorder %s556_s21, %s550_s11 }
  0x1e   : > { %474 = vmatpush1.msk.msra.mxu0 %vm244_vm0, %v208_v6  ;;  %487 = vmatpush1.msk.msra.mxu1 %vm244_vm0, %v208_v6 }
  0x1f   : > { %475 = vmatmul.mubr.msk.f32.vlgmr.msra.gmra.mrb[0].mxu0 %vm231_vm1, %v200_v8  ;;  %477 = vmatmul.mubr.msk.f32.vlgmr.msra.gmra.mrb[0].mxu1 %vm231_vm1, %v202_v9  ;;  %p552_p13 = pnand %p551_p12, %p695_p4  ;;  %p559_p3 = por %p558_p2, %p557_p1 }
  0x20   : > { %319 = vmatprep.mubr.f32.mxu0 %v630_v0  ;;  %331 = vmatprep.mubr.f32.mxu1 %v630_v0 }
  0x21   : > { %p553_p0 = pneg %p552_p13 }
  0x23   : > { %476 = vmatmul.mubr.msk.f32.gmra.mrb[2].mxu0 %vm231_vm1, %v201_v10  ;;  %478 = vmatmul.mubr.msk.f32.gmra.mrb[2].mxu1 %vm231_vm1, %v203_v11  ;;  %p560_p5 = pnand %p559_p3, %p553_p0 }
  0x90   : > { %v222_v12 = vpop.permute.xlu1 %221  ;;  %v212_v13 = vpop.permute.xlu0 %211 }
  0x94   : > { %v227_v24 = vpop.permute.xlu1 %226  ;;  %v217_v25 = vpop.permute.xlu0 %216 }
  0xf2   : > { %v315_v14 = vpop.f32.mrb[0].mxu0  ;;  %v327_v15 = vpop.f32.mrb[0].mxu1 }
  0xf3   : > { %v316_v16 = vadd.f32 %v315_v14, %v212_v13  ;;  %v328_v17 = vadd.f32 %v327_v15, %v222_v12  ;;  %v317_v18 = vpop.f32.mrb[1].mxu0  ;;  %v329_v19 = vpop.f32.mrb[1].mxu1 }
  0xf4   : > { %v318_v20 = vadd.f32 %v317_v18, %v212_v13  ;;  %v330_v21 = vadd.f32 %v329_v19, %v222_v12 }
  0xf5   : > { %vm338_vm2 = vcmp.ge.f32.partialorder %v316_v16, 0.0  ;;  %v346_v22 = vmul.f32 0.2, %v316_v16  ;;  %vm342_vm3 = vcmp.ge.f32.partialorder %v328_v17, 0.0  ;;  %v350_v23 = vmul.f32 0.2, %v328_v17 }
  0xf6   : > { %vm339_vm4 = vcmp.ge.f32.partialorder %v318_v20, 0.0  ;;  %v347_v26 = vmul.f32 0.2, %v318_v20  ;;  %vm343_vm5 = vcmp.ge.f32.partialorder %v330_v21, 0.0  ;;  %v351_v27 = vmul.f32 0.2, %v330_v21 }
  0xf7   : > { %v354_v28 = vsel %vm338_vm2, %v316_v16, %v346_v22  ;;  %v358_v29 = vsel %vm342_vm3, %v328_v17, %v350_v23  ;;  %v321_v30 = vpop.f32.mrb[2].mxu0  ;;  %v333_v31 = vpop.f32.mrb[2].mxu1 }
  0xf8   : > { %362 = vst [vmem:[%s742_s5] sm:$0xff] %v354_v28  ;;  %366 = vst [vmem:[%s742_s5 + $0x20] sm:$0xff] %v358_v29  ;;  %v355_v32 = vsel %vm339_vm4, %v318_v20, %v347_v26  ;;  %v359_v33 = vsel %vm343_vm5, %v330_v21, %v351_v27  ;;  %v322_v34 = vadd.f32 %v321_v30, %v217_v25  ;;  %v323_v36 = vpop.f32.mrb[3].mxu0  ;;  %v335_v37 = vpop.f32.mrb[3].mxu1 }
  0xf9   : > { %v334_v35 = vadd.f32 %v333_v31, %v227_v24  ;;  %363 = vst [vmem:[%s742_s5 + $0x8] sm:$0xff] %v355_v32  ;;  %367 = vst [vmem:[%s742_s5 + $0x28] sm:$0xff] %v359_v33  ;;  %v324_v38 = vadd.f32 %v323_v36, %v217_v25  ;;  %v336_v39 = vadd.f32 %v335_v37, %v227_v24 }
  0xfa   : > { %vm340_vm6 = vcmp.ge.f32.partialorder %v322_v34, 0.0  ;;  %v348_v40 = vmul.f32 0.2, %v322_v34 }
  0xfb   : > { %vm344_vm7 = vcmp.ge.f32.partialorder %v334_v35, 0.0  ;;  %v352_v41 = vmul.f32 0.2, %v334_v35  ;;  %vm341_vm8 = vcmp.ge.f32.partialorder %v324_v38, 0.0  ;;  %v349_v42 = vmul.f32 0.2, %v324_v38 }
  0xfc   : > { %vm345_vm9 = vcmp.ge.f32.partialorder %v336_v39, 0.0  ;;  %v353_v43 = vmul.f32 0.2, %v336_v39  ;;  %v356_v44 = vsel %vm340_vm6, %v322_v34, %v348_v40 }
  0xfd   : > { %v360_v45 = vsel %vm344_vm7, %v334_v35, %v352_v41  ;;  %364 = vst [vmem:[%s742_s5 + $0x10] sm:$0xff] %v356_v44  ;;  %v357_v46 = vsel %vm341_vm8, %v324_v38, %v349_v42 }
  0xfe   : > { %368 = vst [vmem:[%s742_s5 + $0x30] sm:$0xff] %v360_v45  ;;  %v361_v47 = vsel %vm345_vm9, %v336_v39, %v353_v43  ;;  %365 = vst [vmem:[%s742_s5 + $0x18] sm:$0xff] %v357_v46 }
  0xff   : > { %369 = vst [vmem:[%s742_s5 + $0x38] sm:$0xff] %v361_v47 }
 0x100   : > { %563 = shalt.err (!%p560_p5)
}
 0x101   : > { %s564_s23 = scalar_lea.hbm %s753_s9, 1024  ;;  %s568_s28 = scalar_lea.hbm %s812_s3, 2048 }
 0x102   : > { %p565_p6 = scmp.ne.s32.totalorder %s753_s9, %s564_s23  ;;  %p569_p10 = scmp.lt.u32.totalorder %s753_s9, %s812_s3 }
 0x103   : > { %p570_p11 = scmp.lt.u32.totalorder %s568_s28, %s564_s23  ;;  %p572_p13 = scmp.lt.u32.totalorder %s564_s23, %s753_s9 }
 0x104   : > { %p566_p7 = pnand %p565_p6, %p695_p4 }
 0x105   : > { %p571_p12 = por %p570_p11, %p569_p10 }
 0x106   : > { %p567_p9 = pneg %p566_p7 }
 0x107   : > { %p573_p0 = por %p572_p13, %p571_p12 }
 0x109   : > { %p574_p1 = pnand %p573_p0, %p567_p9 }
 0x10b   : > { %577 = shalt.err (!%p574_p1)
}
 0x10c   : > { %s633_s4 = smov 256   ;;  %s634_s5 = smov 16  }
 0x10d   : > { %488 = dma.vmem_to_hbm [thread:$0]  (%p695_p4), %s755_s7, 1024, %s753_s9, %s763_s10, %s633_s4, %s633_s4, %s634_s5  }
 0x10e PF: > { %p494_p2 = scmp.ge.s32.totalorder %s628_s17, 2  ;;  %s401_s6 = sand.u32 1, %s608_s12  }
 0x10f   : > { %s402_s15 = scalar_lea.sflag [#allocation3], %s401_s6 }
 0x110   : > { %p491_p3 = pnand %p494_p2, %p702_p8 }
 0x112   : > { %603 = dma.done.wait (!%p491_p3), %s402_s15, 1024  }
 0x113   : > { %605 = vsyncadd (!%p491_p3), %s402_s15, 4294966272  ;;  %s16_s17 = sadd.s32 1, %s628_s17   ;;  %s815_s12 = smov %s612_s13 }
 0x114   : > { %p13_p5 = scmp.ge.s32.totalorder %s16_s17, 4   ;;  %s816_s13 = smov %s616_s14 }
 0x115   : > { %s817_s14 = smov %s708_s25  ;;  %s818_s15 = smov %s624_s16 }
 0x116   : > { %s819_s16 = smov %s821_s20  ;;  %15 = sbr.rel (!%p13_p5) target bundleno = 4 (0x4), region = 67 }
 0x11d   :  { %407 = vsyncpa [#allocation3], 1 }
 0x11e   :  { %409 = vsyncpa [#allocation3 + $0x1], 1 }

</bundles_post_ra>
